<compile_context>
chip_gen: v6e
topology: v6e:2x2x1
jax: 0.10.0
libtpu: 0.0.40
codegen_flags: <defaults>
</compile_context>

<pallas_src>
import functools

import jax
import jax.numpy as jnp
from jax.experimental import pallas as pl
from jax.experimental.pallas import tpu as pltpu

IGNORE_LABEL = -1
_LANES = 128
_CHUNK_ROWS = 32          # inner compute chunk: (32, 128) pixels = 16 f32 vregs


def _round_up(x, m):
    return (x + m - 1) // m * m


def _vmem_budgets():
    """(per-step tile budget, vmem_limit_bytes), derived from the chip."""
    cap = 64 << 20                       # conservative fallback (v7x per-TC)
    try:
        cap = int(pltpu.get_tpu_info().vmem_capacity_bytes)
    except Exception:
        pass
    tile_budget = min(6 << 20, cap // 8)   # small tiles: grid stays shardable
    vmem_limit = min(32 << 20, cap // 2)
    return tile_budget, vmem_limit


def _boundary_loss_kernel(logits_ref, gt_ref, sem_ref, sum_ref, cnt_ref, *,
                          ignore_label, num_classes, rows_total,
                          rows_per_block, num_row_blocks):
    # logits_ref: (1, C, SR, 128) native dtype
    # gt_ref, sem_ref: (1, SR, 128) caller's int dtype
    # sum_ref, cnt_ref: (1, 1, 32, 128) f32 per-grid-block partials
    n_chunks = rows_per_block // _CHUNK_ROWS                # static
    # Hoisted once per grid step (JAX does not CSE broadcast_in_dim).
    iota_rows = jax.lax.broadcasted_iota(
        jnp.int32, (_CHUNK_ROWS, _LANES), 0)

    def run(masked):
        if masked:
            row_base = pl.program_id(1) * rows_per_block

        def chunk_body(j, carry):
            s_acc, c_acc = carry
            r0 = pl.multiple_of(j * _CHUNK_ROWS, _CHUNK_ROWS)
            gt = gt_ref[0, pl.ds(r0, _CHUNK_ROWS), :].astype(jnp.int32)
            sem = sem_ref[0, pl.ds(r0, _CHUNK_ROWS), :].astype(jnp.int32)
            # boundary_gt[sem_gt == ignore] = ignore
            gt_eff = jnp.where(sem == ignore_label, ignore_label, gt)
            valid = gt_eff != ignore_label
            if masked:
                # Rows past the real array carry undefined DMA data; only the
                # last row-block ever takes this path.  Scalar limit + hoisted
                # iota keeps it to one vector compare per chunk.
                limit = rows_total - row_base - r0
                valid = valid & (iota_rows < limit)

            def cls_row(ci):
                return logits_ref[0, ci, pl.ds(r0, _CHUNK_ROWS), :].astype(
                    jnp.float32)

            if num_classes == 2:
                # Binary-boundary fast path: one exp + one log1p per pixel.
                l0 = cls_row(0)
                l1 = cls_row(1)
                m = jnp.maximum(l0, l1)
                lse = m + jnp.log1p(jnp.exp(-jnp.abs(l0 - l1)))
                picked = jnp.where(gt_eff == 1, l1, l0)
            else:
                # General path: each class row loaded (and cast) exactly once.
                logs = [cls_row(ci) for ci in range(num_classes)]
                m = logs[0]
                for lc in logs[1:]:
                    m = jnp.maximum(m, lc)
                picked = logs[0]
                for ci in range(1, num_classes):
                    picked = jnp.where(gt_eff == ci, logs[ci], picked)
                se = jnp.exp(logs[0] - m)
                for lc in logs[1:]:
                    se = se + jnp.exp(lc - m)
                lse = m + jnp.log(se)

            # where (not multiply-by-mask) so garbage/inf in masked lanes is safe
            loss = jnp.where(valid, lse - picked, 0.0)
            return s_acc + loss, c_acc + valid.astype(jnp.float32)

        zeros = jnp.zeros((_CHUNK_ROWS, _LANES), jnp.float32)
        s_acc, c_acc = jax.lax.fori_loop(0, n_chunks, chunk_body,
                                         (zeros, zeros))
        sum_ref[0, 0] = s_acc
        cnt_ref[0, 0] = c_acc

    needs_mask = (rows_total % rows_per_block) != 0        # static
    if not needs_mask:
        run(False)
    elif num_row_blocks == 1:
        run(True)
    else:
        is_last = pl.program_id(1) == num_row_blocks - 1
        pl.when(is_last)(lambda: run(True))
        pl.when(jnp.logical_not(is_last))(lambda: run(False))


def boundary_loss(boundary_pred, boundary_gt, sem_gt,
                  ignore_label=IGNORE_LABEL):
    """boundary_pred: (N, C, H, W) float logits (any float dtype)
       boundary_gt:   (N, H, W) int labels in [0, C) or ignore_label
       sem_gt:        (N, H, W) int semantic labels (ignore_label marks ignore)

       Returns mean CE over non-ignored pixels (NaN if every pixel is ignored,
       matching the PyTorch reference)."""
    n, c, h, w = boundary_pred.shape
    hw = h * w
    # Lane-dense reshape only needs H*W to be a multiple of 128.  Labels keep
    # the caller's (possibly narrow) dtype; the kernel casts per chunk.
    hw_pad = _round_up(hw, _LANES)

    logits = boundary_pred.reshape(n, c, hw)          # free reshape of NCHW
    gt = boundary_gt.reshape(n, hw)
    sem = sem_gt.reshape(n, hw)
    if hw_pad != hw:
        # Only non-128-aligned H*W pays this pad copy; padded gt/sem lanes are
        # ignore_label so they drop out via the in-kernel ignore mask.
        pad = hw_pad - hw
        logits = jnp.pad(logits, ((0, 0), (0, 0), (0, pad)))
        gt = jnp.pad(gt, ((0, 0), (0, pad)), constant_values=ignore_label)
        sem = jnp.pad(sem, ((0, 0), (0, pad)), constant_values=ignore_label)

    r = hw_pad // _LANES
    logits = logits.reshape(n, c, r, _LANES)
    gt = gt.reshape(n, r, _LANES)
    sem = sem.reshape(n, r, _LANES)

    tile_budget, vmem_limit = _vmem_budgets()

    lbytes = jnp.dtype(logits.dtype).itemsize
    gbytes = jnp.dtype(gt.dtype).itemsize + jnp.dtype(sem.dtype).itemsize
    bytes_per_row = _LANES * (c * lbytes + gbytes)
    # Rows (of 128 pixels) per grid step: fit double-buffered in the budget,
    # but cap so the grid has enough steps to balance 2 TensorCores (v7x) and
    # keep the pipeline busy.  Multiple of 32 also satisfies sublane packing
    # for int8/int16/bf16 operands.
    sr = (tile_budget // (2 * bytes_per_row)) // _CHUNK_ROWS * _CHUNK_ROWS
    target_steps = max(2, -(-8 // n))
    sr_cap = _round_up(max(1, -(-r // target_steps)), _CHUNK_ROWS)
    sr = max(_CHUNK_ROWS, min(sr, sr_cap, _round_up(r, _CHUNK_ROWS)))

    gr = -(-r // sr)
    grid = (n, gr)

    kernel = functools.partial(
        _boundary_loss_kernel,
        ignore_label=ignore_label, num_classes=c,
        rows_total=r, rows_per_block=sr, num_row_blocks=gr)

    part_shape = jax.ShapeDtypeStruct((n, gr, _CHUNK_ROWS, _LANES),
                                      jnp.float32)
    psum, pcnt = pl.pallas_call(
        kernel,
        out_shape=(part_shape, part_shape),
        grid_spec=pltpu.PrefetchScalarGridSpec(
            num_scalar_prefetch=0,
            grid=grid,
            in_specs=[
                pl.BlockSpec((1, c, sr, _LANES), lambda i, j: (i, 0, j, 0)),
                pl.BlockSpec((1, sr, _LANES), lambda i, j: (i, j, 0)),
                pl.BlockSpec((1, sr, _LANES), lambda i, j: (i, j, 0)),
            ],
            out_specs=[
                pl.BlockSpec((1, 1, _CHUNK_ROWS, _LANES),
                             lambda i, j: (i, j, 0, 0)),
                pl.BlockSpec((1, 1, _CHUNK_ROWS, _LANES),
                             lambda i, j: (i, j, 0, 0)),
            ],
        ),
        compiler_params=pltpu.CompilerParams(
            dimension_semantics=("parallel", "parallel"),
            vmem_limit_bytes=vmem_limit),
    )(logits, gt, sem)

    # Mean over non-ignored pixels (matches F.cross_entropy reduction='mean').
    return jnp.sum(psum) / jnp.sum(pcnt)


def _reference(boundary_pred, boundary_gt, sem_gt, ignore_label=IGNORE_LABEL):
    n, c, h, w = boundary_pred.shape
    logits = jnp.transpose(boundary_pred, (0, 2, 3, 1)).reshape(-1, c)
    gt = boundary_gt.reshape(-1).astype(jnp.int32)
    sem = sem_gt.reshape(-1).astype(jnp.int32)
    gt = jnp.where(sem == ignore_label, ignore_label, gt)
    valid = gt != ignore_label
    logp = jax.nn.log_softmax(logits.astype(jnp.float32), axis=-1)
    picked = jnp.take_along_axis(
        logp, jnp.clip(gt, 0, c - 1)[:, None], axis=-1)[:, 0]
    losses = jnp.where(valid, -picked, 0.0)
    return jnp.sum(losses) / jnp.sum(valid.astype(jnp.float32))


if __name__ == "__main__":
    key = jax.random.PRNGKey(0)
    k1, k2, k3 = jax.random.split(key, 3)

    N, C, H, W = 2, 2, 16, 16
    boundary_pred = jax.random.normal(k1, (N, C, H, W), dtype=jnp.float32)
    boundary_gt = jax.random.randint(k2, (N, H, W), 0, C, dtype=jnp.int32)
    # sem_gt contains some ignore (-1) pixels
    sem_gt = jax.random.randint(k3, (N, H, W), -1, 5, dtype=jnp.int32)

    loss = boundary_loss(boundary_pred, boundary_gt, sem_gt)
    loss = jax.block_until_ready(loss)

    ref = _reference(boundary_pred, boundary_gt, sem_gt)
    assert jnp.allclose(loss, ref, rtol=1e-5, atol=1e-5), (loss, ref)
    print("KERNEL_OK")
</pallas_src>

<mosaic_0001>
module attributes {stable_mosaic.version = 11 : i64} {
  func.func @_boundary_loss_kernel(%arg0: i32, %arg1: i32, %arg2: memref<1x2x32x128xf32, #tpu.memory_space<vmem>>, %arg3: memref<1x32x128xi32, #tpu.memory_space<vmem>>, %arg4: memref<1x32x128xi32, #tpu.memory_space<vmem>>, %arg5: memref<1x1x32x128xf32, #tpu.memory_space<vmem>>, %arg6: memref<1x1x32x128xf32, #tpu.memory_space<vmem>>) attributes {dimension_semantics = [#tpu.dimension_semantics<parallel>, #tpu.dimension_semantics<parallel>], iteration_bounds = array<i64: 2, 1>, scalar_prefetch = 0 : i64, scratch_operands = 0 : i64, tpu.core_type = #tpu.core_type<tc>, window_params = [{transform_indices = @transform_0, window_bounds = array<i64: 1, 2, 32, 128>}, {transform_indices = @transform_1, window_bounds = array<i64: 1, 32, 128>}, {transform_indices = @transform_2, window_bounds = array<i64: 1, 32, 128>}, {transform_indices = @transform_3, window_bounds = array<i64: 1, 1, 32, 128>}, {transform_indices = @transform_4, window_bounds = array<i64: 1, 1, 32, 128>}]} {
    %0 = tpu.iota {dimensions = array<i32: 0>} : vector<32x128xi32>
    %c32_i32 = arith.constant 32 : i32
    %1 = arith.muli %arg1, %c32_i32 : i32
    %cst = arith.constant 0.000000e+00 : f32
    %2 = vector.broadcast %cst : f32 to vector<32x128xf32>
    %c0_i32 = arith.constant 0 : i32
    %c32_i32_0 = arith.constant 32 : i32
    %3 = arith.muli %c0_i32, %c32_i32_0 : i32
    %4 = tpu.assume_multiple %3, 32 : i32
    %c0 = arith.constant 0 : index
    %5 = arith.index_cast %4 : i32 to index
    %c0_1 = arith.constant 0 : index
    %6 = vector.load %arg3[%c0, %5, %c0_1] : memref<1x32x128xi32, #tpu.memory_space<vmem>>, vector<1x32x128xi32>
    %7 = vector.shape_cast %6 : vector<1x32x128xi32> to vector<32x128xi32>
    %c0_2 = arith.constant 0 : index
    %8 = arith.index_cast %4 : i32 to index
    %c0_3 = arith.constant 0 : index
    %9 = vector.load %arg4[%c0_2, %8, %c0_3] : memref<1x32x128xi32, #tpu.memory_space<vmem>>, vector<1x32x128xi32>
    %10 = vector.shape_cast %9 : vector<1x32x128xi32> to vector<32x128xi32>
    %c-1_i32 = arith.constant -1 : i32
    %11 = vector.broadcast %c-1_i32 : i32 to vector<32x128xi32>
    %12 = arith.cmpi eq, %10, %11 : vector<32x128xi32>
    %c-1_i32_4 = arith.constant -1 : i32
    %13 = vector.broadcast %c-1_i32_4 : i32 to vector<32x128xi32>
    %14 = arith.select %12, %13, %7 : vector<32x128xi1>, vector<32x128xi32>
    %c-1_i32_5 = arith.constant -1 : i32
    %15 = vector.broadcast %c-1_i32_5 : i32 to vector<32x128xi32>
    %16 = arith.cmpi ne, %14, %15 : vector<32x128xi32>
    %c2_i32 = arith.constant 2 : i32
    %17 = arith.subi %c2_i32, %1 : i32
    %18 = arith.subi %17, %4 : i32
    %19 = vector.broadcast %18 : i32 to vector<32x128xi32>
    %20 = arith.cmpi slt, %0, %19 : vector<32x128xi32>
    %21 = arith.andi %16, %20 : vector<32x128xi1>
    %c0_6 = arith.constant 0 : index
    %c0_7 = arith.constant 0 : index
    %22 = arith.index_cast %4 : i32 to index
    %c0_8 = arith.constant 0 : index
    %23 = vector.load %arg2[%c0_6, %c0_7, %22, %c0_8] : memref<1x2x32x128xf32, #tpu.memory_space<vmem>>, vector<1x1x32x128xf32>
    %24 = vector.shape_cast %23 : vector<1x1x32x128xf32> to vector<32x128xf32>
    %c0_9 = arith.constant 0 : index
    %c1 = arith.constant 1 : index
    %25 = arith.index_cast %4 : i32 to index
    %c0_10 = arith.constant 0 : index
    %26 = vector.load %arg2[%c0_9, %c1, %25, %c0_10] : memref<1x2x32x128xf32, #tpu.memory_space<vmem>>, vector<1x1x32x128xf32>
    %27 = vector.shape_cast %26 : vector<1x1x32x128xf32> to vector<32x128xf32>
    %28 = arith.maximumf %24, %27 : vector<32x128xf32>
    %29 = arith.subf %24, %27 : vector<32x128xf32>
    %30 = math.absf %29 : vector<32x128xf32>
    %cst_11 = arith.constant 0.000000e+00 : f32
    %31 = vector.broadcast %cst_11 : f32 to vector<32x128xf32>
    %32 = arith.subf %31, %30 : vector<32x128xf32>
    %33 = math.exp %32 : vector<32x128xf32>
    %34 = math.log1p %33 : vector<32x128xf32>
    %35 = arith.addf %28, %34 : vector<32x128xf32>
    %c1_i32 = arith.constant 1 : i32
    %36 = vector.broadcast %c1_i32 : i32 to vector<32x128xi32>
    %37 = arith.cmpi eq, %14, %36 : vector<32x128xi32>
    %38 = arith.select %37, %27, %24 : vector<32x128xi1>, vector<32x128xf32>
    %39 = arith.subf %35, %38 : vector<32x128xf32>
    %cst_12 = arith.constant 0.000000e+00 : f32
    %40 = vector.broadcast %cst_12 : f32 to vector<32x128xf32>
    %41 = arith.select %21, %39, %40 : vector<32x128xi1>, vector<32x128xf32>
    %42 = arith.addf %2, %41 : vector<32x128xf32>
    %43 = arith.extui %21 : vector<32x128xi1> to vector<32x128xi32>
    %44 = arith.sitofp %43 : vector<32x128xi32> to vector<32x128xf32>
    %45 = arith.addf %2, %44 : vector<32x128xf32>
    %c1_i32_13 = arith.constant 1 : i32
    %c0_14 = arith.constant 0 : index
    %c0_15 = arith.constant 0 : index
    %c0_16 = arith.constant 0 : index
    %c0_17 = arith.constant 0 : index
    %46 = vector.load %arg5[%c0_14, %c0_15, %c0_16, %c0_17] : memref<1x1x32x128xf32, #tpu.memory_space<vmem>>, vector<1x1x32x128xf32>
    %47 = vector.shape_cast %46 : vector<1x1x32x128xf32> to vector<32x128xf32>
    %48 = vector.shape_cast %42 : vector<32x128xf32> to vector<1x1x32x128xf32>
    tpu.vector_store %arg5[%c0_14, %c0_15, %c0_16, %c0_17], %48 {strides = array<i32>} : memref<1x1x32x128xf32, #tpu.memory_space<vmem>>, vector<1x1x32x128xf32>,
    %c0_18 = arith.constant 0 : index
    %c0_19 = arith.constant 0 : index
    %c0_20 = arith.constant 0 : index
    %c0_21 = arith.constant 0 : index
    %49 = vector.load %arg6[%c0_18, %c0_19, %c0_20, %c0_21] : memref<1x1x32x128xf32, #tpu.memory_space<vmem>>, vector<1x1x32x128xf32>
    %50 = vector.shape_cast %49 : vector<1x1x32x128xf32> to vector<32x128xf32>
    %51 = vector.shape_cast %45 : vector<32x128xf32> to vector<1x1x32x128xf32>
    tpu.vector_store %arg6[%c0_18, %c0_19, %c0_20, %c0_21], %51 {strides = array<i32>} : memref<1x1x32x128xf32, #tpu.memory_space<vmem>>, vector<1x1x32x128xf32>,
    return
  }
  func.func @transform_0(%arg0: i32, %arg1: i32) -> (i32, i32, i32, i32) {
    %c0_i32 = arith.constant 0 : i32
    %c0_i32_0 = arith.constant 0 : i32
    %c0_i32_1 = arith.constant 0 : i32
    return %arg0, %c0_i32, %arg1, %c0_i32_0 : i32, i32, i32, i32
  }
  func.func @transform_1(%arg0: i32, %arg1: i32) -> (i32, i32, i32) {
    %c0_i32 = arith.constant 0 : i32
    %c0_i32_0 = arith.constant 0 : i32
    return %arg0, %arg1, %c0_i32 : i32, i32, i32
  }
  func.func @transform_2(%arg0: i32, %arg1: i32) -> (i32, i32, i32) {
    %c0_i32 = arith.constant 0 : i32
    %c0_i32_0 = arith.constant 0 : i32
    return %arg0, %arg1, %c0_i32 : i32, i32, i32
  }
  func.func @transform_3(%arg0: i32, %arg1: i32) -> (i32, i32, i32, i32) {
    %c0_i32 = arith.constant 0 : i32
    %c0_i32_0 = arith.constant 0 : i32
    %c0_i32_1 = arith.constant 0 : i32
    return %arg0, %arg1, %c0_i32, %c0_i32_0 : i32, i32, i32, i32
  }
  func.func @transform_4(%arg0: i32, %arg1: i32) -> (i32, i32, i32, i32) {
    %c0_i32 = arith.constant 0 : i32
    %c0_i32_0 = arith.constant 0 : i32
    %c0_i32_1 = arith.constant 0 : i32
    return %arg0, %arg1, %c0_i32, %c0_i32_0 : i32, i32, i32, i32
  }
}

</mosaic_0001>

<bundles_post_ra>
// kernel: tpu_custom_call.1
= control target key start
LH: loop header
LB: loop body
LE: loop exit
PB: predicated region body
PF: predicated region fallthrough
CT: control target
= control target key end

     0   :  { %10 = vsyncpa [#allocation3], 0  ;;  %s1268_s0 = inlined_call_operand.hbm [shape: f32[2,2,2,128], index: 0, kind: input, shape index: {}]   ;;  %s1269_s1 = inlined_call_operand.hbm [shape: s32[2,2,128], index: 1, kind: input, shape index: {}]   ;;  %s1270_s2 = inlined_call_operand.hbm [shape: s32[2,2,128], index: 2, kind: input, shape index: {}]   ;;  %s1271_s3 = inlined_call_operand.hbm [shape: f32[2,1,32,128], index: 3, kind: output, shape index: {0}]   ;;  %s1272_s4 = inlined_call_operand.hbm [shape: f32[2,1,32,128], index: 4, kind: output, shape index: {1}]  }
   0x1   :  { %12 = vsyncpa [#allocation3 + $0x1], 0 }
   0x2   :  { %13 = vsyncpa [#allocation6], 0 }
   0x3   :  { %15 = vsyncpa [#allocation6 + $0x1], 0 }
   0x4   :  { %16 = vsyncpa [#allocation4], 0 }
   0x5   :  { %18 = vsyncpa [#allocation4 + $0x1], 0 }
   0x6   :  { %19 = vsyncpa [#allocation10], 0 }
   0x7   :  { %21 = vsyncpa [#allocation10 + $0x1], 0  ;;  %s1052_s15 = smov 0   ;;  %s1054_s16 = smov 0  }
   0x8   :  { %s1056_s17 = smov 0   ;;  %s1058_s18 = smov 0  }
   0x9   :  { %s1060_s19 = smov 0   ;;  %s1062_s20 = smov 0  }
   0xa LB: > { %s1083_s21 = sadd.s32 4294967295, %s1009_s20   ;;  %s738_s22 = sadd.s32 4294967294, %s1009_s20   ;;  %s1009_s20 = sphi %s1062_s20, %s27_s20   ;;  %s1005_s19 = sphi %s1060_s19, %s1288_s19   ;;  %s1001_s18 = sphi %s1058_s18, %s1287_s18   ;;  %s997_s17 = sphi %s1056_s17, %s1286_s17   ;;  %s993_s16 = sphi %s1054_s16, %s1285_s16   ;;  %s989_s15 = sphi %s1052_s15, %s1284_s15  }
   0xb   : > { %s39_s23 = sadd.s32 1, %s1005_s19  ;;  %s48_s24 = sadd.s32 1, %s997_s17 }
   0xc   : > { %p41_p0 = scmp.ge.s32.totalorder %s39_s23, 2  ;;  %p55_p1 = scmp.ne.s32.totalorder %s997_s17, %s993_s16 }
   0xd   : > { %p56_p2 = scmp.eq.s32.totalorder %s1009_s20, 0  ;;  %p61_p3 = scmp.ne.s32.totalorder %s993_s16, %s989_s15 }
   0xe   : > { %s1290_s23 = smov (%p41_p0, %s39_s23), 0  ;;  %p62_p5 = scmp.eq.s32.totalorder %s1083_s21, 0 }
   0xf   : > { %1274 = sst [smem:[#allocation17_spill]] %s1290_s23  ;;  %p1095_p4 = por %p56_p2, %p55_p1 }
  0x10   : > { %s43_s26 = ssub.s32 %s1005_s19, %s1290_s23  ;;  %p143_p6 = scmp.eq.s32.totalorder %s1083_s21, 1 }
  0x11   : > { %p46_p7 = scmp.eq.s32.totalorder %s43_s26, 0  ;;  %p1103_p8 = por %p62_p5, %p61_p3 }
  0x12   : > { %p1107_p9 = por %p143_p6, %p55_p1  ;;  %p149_p10 = scmp.eq.s32.totalorder %s738_s22, 1 }
  0x13   : > { %s1112_s29 = scalar_select %p46_p7, %s997_s17, %s48_s24  }
  0x14   : > { %p1114_p11 = por %p149_p10, %p61_p3  ;;  %p740_p12 = scmp.ge.s32.totalorder %s1009_s20, 2 }
  0x15   : > { %1278 = sst [smem:[#allocation18_spill]] %s1112_s29 }
  0x16   : > { %193 = sbr.rel (%p740_p12) target bundleno = 83 (0x53), region = 16 }
  0x1b   : > { %196 = sbr.rel (!%p1095_p4) target bundleno = 45 (0x2d), region = 20 }
  0x20   : > { %s197_s5 = sand.u32 1, %s997_s17  }
  0x21   : > { %s741_s6 = sshll.u32 %s197_s5, 6  ;;  %s198_s7 = scalar_lea.sflag [#allocation3], %s197_s5 }
  0x22   : > { %s201_s8 = scalar_lea.vmem [#allocation2], %s741_s6 }
  0x23   : > { %207 = vsyncadd %s198_s7, 960  ;;  %s769_s9 = sshll.u32 %s1005_s19, 6  ;;  %s219_s10 = sld [smem:[#allocation0]]  }
  0x24   : > { %s212_s13 = scalar_lea.hbm %s1268_s0, %s769_s9  ;;  %s227_s14 = sshll.u32 %s201_s8, 4  ;;  %s228_s14 = int_to_ptr.vmem [resolvable:$true] %s227_s14 }
  0x25   : > { %s1011_s22 = smov 32   ;;  %s1012_s24 = smov 512  }
  0x26   : > { %234 = sst [smem:[#allocation12]] %s1011_s22  ;;  %s1013_s26 = smov 1  }
  0x27   : > { %236 = sst [smem:[#allocation12 + $0x1]] %s1012_s24  ;;  %s1014_s6 = smov 2  }
  0x28   : > { %238 = sst [smem:[#allocation12 + $0x2]] %s1013_s26  ;;  %s1015_s29 = smov 131072  }
  0x29   : > { %s744_s23 = sshll.u32 %s219_s10, 26  ;;  %240 = sst [smem:[#allocation12 + $0x3]] %s1011_s22 }
  0x2a   : > { %s745_s5 = sadd.s32 134217728, %s744_s23  ;;  %242 = sst [smem:[#allocation12 + $0x4]] %s1011_s22 }
  0x2b   : > { %244 = sst [smem:[#allocation12 + $0x5]] %s1014_s6 }
  0x2c   : > { %246 = dma.general %s212_s13, 64, %s228_s14, %s198_s7, %s1015_s29, [#allocation12], %s745_s5, 0  }
  0x2d PF: > { %249 = sbr.rel (!%p1095_p4) target bundleno = 64 (0x40), region = 24  ;;  %s250_s8 = sand.u32 (%p1095_p4), 1, %s1009_s20  }
  0x2e   : > { %s252_s9 = sand.u32 (%p1095_p4), 1, %s997_s17   ;;  %s251_s12 = scalar_lea.sflag (%p1095_p4), [#allocation6], %s250_s8 }
  0x2f   : > { %s746_s11 = sshll.u32 (%p1095_p4), %s252_s9, 5 }
  0x30   : > { %s254_s24 = scalar_lea.vmem (%p1095_p4), [#allocation5], %s746_s11 }
  0x32   : > { %260 = vsyncadd %s251_s12, 480  ;;  %s747_s10 = sshll.u32 %s1005_s19, 5  ;;  %s266_s23 = sshll.u32 %s254_s24, 4  ;;  %s267_s23 = int_to_ptr.vmem [resolvable:$true] %s266_s23 }
  0x33   : > { %s264_s6 = scalar_lea.hbm %s1269_s1, %s747_s10  ;;  %s861_s29 = scalar_lea.vmem %s267_s23, 32 }
  0x34   : > { %p862_p13 = scmp.ne.s32.totalorder %s267_s23, %s861_s29  ;;  %s1016_s7 = smov [#allocation5]  }
  0x35   : > { %s863_s13 = sshll.u32 %s1016_s7, 4  ;;  %s864_s13 = int_to_ptr.vmem [resolvable:$false] %s863_s13 }
  0x36   : > { %s865_s14 = scalar_lea.vmem %s864_s13, 1024  ;;  %p866_p0 = scmp.lt.s32.totalorder %s267_s23, %s864_s13 }
  0x37   : > { %p867_p1 = scmp.lt.s32.totalorder %s865_s14, %s861_s29 }
  0x39   : > { %p868_p2 = por %p867_p1, %p866_p0 }
  0x3b   : > { %p869_p3 = pnand %p868_p2, %p862_p13 }
  0x3d   : > { %872 = shalt.err (!%p869_p3)
}
  0x3e   : > { %s1017_s5 = smov 32   ;;  %s1018_s8 = smov 2  }
  0x3f   : > { %272 = dma.hbm_to_vmem [thread:$0]  %s264_s6, 32, %s267_s23, %s251_s12, %s1017_s5, %s1017_s5, %s1018_s8  }
  0x40 PF: > { %275 = sbr.rel (!%p1095_p4) target bundleno = 83 (0x53), region = 28  ;;  %s276_s9 = sand.u32 (%p1095_p4), 1, %s1009_s20  }
  0x41   : > { %s278_s11 = sand.u32 (%p1095_p4), 1, %s997_s17   ;;  %s277_s10 = scalar_lea.sflag (%p1095_p4), [#allocation6], %s276_s9 }
  0x42   : > { %s748_s24 = sshll.u32 (%p1095_p4), %s278_s11, 5 }
  0x43   : > { %s280_s22 = scalar_lea.vmem (%p1095_p4), [#allocation7], %s748_s24 }
  0x45   : > { %286 = vsyncadd %s277_s10, 480  ;;  %s749_s26 = sshll.u32 %s1005_s19, 5  ;;  %s292_s29 = sshll.u32 %s280_s22, 4  ;;  %s293_s29 = int_to_ptr.vmem [resolvable:$true] %s292_s29 }
  0x46   : > { %s290_s14 = scalar_lea.hbm %s1270_s2, %s749_s26  ;;  %s883_s12 = scalar_lea.vmem %s293_s29, 32 }
  0x47   : > { %p884_p5 = scmp.ne.s32.totalorder %s293_s29, %s883_s12  ;;  %s1019_s25 = smov [#allocation7]  }
  0x48   : > { %s885_s23 = sshll.u32 %s1019_s25, 4  ;;  %s886_s23 = int_to_ptr.vmem [resolvable:$false] %s885_s23 }
  0x49   : > { %s887_s6 = scalar_lea.vmem %s886_s23, 1024  ;;  %p888_p4 = scmp.lt.s32.totalorder %s293_s29, %s886_s23 }
  0x4a   : > { %p889_p6 = scmp.lt.s32.totalorder %s887_s6, %s883_s12 }
  0x4c   : > { %p890_p7 = por %p889_p6, %p888_p4 }
  0x4e   : > { %p891_p10 = pnand %p890_p7, %p884_p5 }
  0x50   : > { %894 = shalt.err (!%p891_p10)
}
  0x51   : > { %s1020_s5 = smov 32   ;;  %s1021_s8 = smov 2  }
  0x52   : > { %298 = dma.hbm_to_vmem [thread:$0]  %s290_s14, 32, %s293_s29, %s277_s10, %s1020_s5, %s1020_s5, %s1021_s8  }
  0x53 PF: > { %p750_p13 = scmp.ge.s32.totalorder %s1009_s20, 1  ;;  %p300_p0 = scmp.lt.s32.totalorder %s1009_s20, 3 }
  0x55   : > { %p301_p1 = pnand %p750_p13, %p300_p0 }
  0x56   : > { %s1147_s9 = sand.u32 (!%p301_p1), 1, %s993_s16  }
  0x57   : > { %304 = sbr.rel (%p301_p1) target bundleno = 173 (0xad), region = 32  ;;  %s751_s11 = sshll.u32 (!%p301_p1), %s1147_s9, 6 }
  0x58   : > { %s307_s24 = scalar_lea.sflag (!%p301_p1), [#allocation3], %s1147_s9  ;;  %s310_s22 = scalar_lea.vmem (!%p301_p1), [#allocation2], %s751_s11 }
  0x5c   : > { %972 = dma.done.wait (%p1103_p8), %s307_s24, 1024  }
  0x5d   : > { %974 = vsyncadd (%p1103_p8), %s307_s24, 4294966272  ;;  %s315_s10 = sand.u32 1, %s1083_s21   ;;  %s752_s26 = sshll.u32 %s1147_s9, 5 }
  0x5e   : > { %s316_s29 = scalar_lea.sflag [#allocation6], %s315_s10  ;;  %s319_s7 = scalar_lea.vmem [#allocation5], %s752_s26 }
  0x5f   : > { %976 = dma.done.wait (%p1103_p8), %s316_s29, 1024  }
  0x60   : > { %978 = vsyncadd (%p1103_p8), %s316_s29, 4294966272  ;;  %v377_v0 = vlaneseq  ;;  %s1161_s13 = scalar_lea.vmem [#allocation8], %s752_s26  ;;  %v1022_v1 = vmov 0.0   ;;  %s367_s21 = scalar_lea.vmem [#allocation9], %s752_s26  ;;  %v383_v3 = vld [vmem:[%s319_s7] sm:$0xff] }
  0x61   : > { %521 = vst [vmem:[%s1161_s13 + $0x8] sm:$0xff] %v1022_v1  ;;  %522 = vst [vmem:[%s1161_s13 + $0x10] sm:$0xff] %v1022_v1  ;;  %s567_s14 = sshll.u32 %s367_s21, 4  ;;  %s328_s27 = scalar_lea.vmem [#allocation7], %s752_s26  ;;  %v414_v5 = vld [vmem:[%s310_s22] sm:$0xff]  ;;  %s1167_s14 = int_to_ptr.vmem [resolvable:$true] %s567_s14 }
  0x62   : > { %523 = vst [vmem:[%s1161_s13 + $0x18] sm:$0xff] %v1022_v1  ;;  %525 = vst [vmem:[%s367_s21 + $0x8] sm:$0xff] %v1022_v1  ;;  %v378_v2 = vshrl.u32 %v377_v0, 7  ;;  %v387_v4 = vld [vmem:[%s328_s27] sm:$0xff]  ;;  %s770_s12 = sshll.u32 %s1001_s18, 9  ;;  %s534_s5 = scalar_lea.sflag [#allocation10], %s1147_s9 }
  0x63   : > { %526 = vst [vmem:[%s367_s21 + $0x10] sm:$0xff] %v1022_v1  ;;  %527 = vst [vmem:[%s367_s21 + $0x18] sm:$0xff] %v1022_v1  ;;  %vm391_vm0 = vcmp.eq.s32.totalorder %v387_v4, 4294967295  ;;  %v756_v6 = vld [vmem:[%s310_s22 + $0x20] sm:$0xff]  ;;  %s1178_s6 = scalar_lea.hbm %s1272_s4, %s770_s12  ;;  %s895_s8 = scalar_lea.vmem %s1167_s14, 512 }
  0x64   : > { %vm406_vm1 = vcmp.lt.s32.totalorder %v378_v2, 2  ;;  %v395_v7 = vsel %vm391_vm0, 4294967295, %v383_v3  ;;  %v428_v8 = vsub.f32 %v414_v5, %v756_v6  ;;  %p896_p8 = scmp.ne.s32.totalorder %s1167_s14, %s895_s8  ;;  %s1023_s11 = smov [#allocation9]  }
  0x65   : > { %vm399_vm2 = vcmp.ne.s32.totalorder %v395_v7, 4294967295  ;;  %s899_s24 = sshll.u32 %s1023_s11, 4  ;;  %s900_s24 = int_to_ptr.vmem [resolvable:$false] %s899_s24 }
  0x66   : > { %vm1169_vm3 = vmand %vm399_vm2, %vm406_vm1  ;;  %v432_v10 = vand.u32 2147483647, %v428_v8  ;;  %p897_p2 = pnand %p896_p8, %p1107_p9  ;;  %s901_s22 = scalar_lea.vmem %s900_s24, 1024 }
  0x67   : > { %v760_v11 = vsel %vm1169_vm3, 1.0, %v1022_v1  ;;  %p902_p5 = scmp.lt.s32.totalorder %s1167_s14, %s900_s24  ;;  %p903_p4 = scmp.lt.s32.totalorder %s901_s22, %s895_s8 }
  0x68   : > { %v436_v12 = vsub.f32 0.0, %v432_v10  ;;  %524 = vst [vmem:[%s367_s21] sm:$0xff] %v760_v11  ;;  %p898_p3 = pneg %p897_p2 }
  0x69   : > { %p904_p6 = por %p903_p4, %p902_p5 }
  0x6b   : > { %p905_p7 = pnand %p904_p6, %p898_p3 }
  0x6d   : > { %908 = shalt.err (!%p905_p7)
}
  0x6e   : > { %s909_s10 = scalar_lea.hbm %s1178_s6, 512  ;;  %s913_s7 = scalar_lea.hbm %s1272_s4, 1024 }
  0x6f   : > { %p910_p10 = scmp.ne.s32.totalorder %s1178_s6, %s909_s10  ;;  %p914_p1 = scmp.lt.s32.totalorder %s1178_s6, %s1272_s4 }
  0x70   : > { %p915_p8 = scmp.lt.s32.totalorder %s913_s7, %s909_s10 }
  0x71   : > { %p911_p13 = pnand %p910_p10, %p1107_p9 }
  0x72   : > { %p916_p2 = por %p915_p8, %p914_p1 }
  0x73   : > { %p912_p0 = pneg %p911_p13 }
  0x75   : > { %p917_p3 = pnand %p916_p2, %p912_p0 }
  0x77   : > { %920 = shalt.err (!%p917_p3)
}
  0x78   : > { %s1024_s25 = smov 128   ;;  %s1025_s23 = smov 8   ;;  %v440_v13 = vmul.f32 1.442695, %v436_v12  ;;  %v424_v21 = vmax.f32 %v414_v5, %v756_v6  ;;  %vm488_vm5 = vcmp.eq.s32.totalorder %v395_v7, 1 }
  0x79   : > { %776 = dma.vmem_to_hbm [thread:$0]  (%p1107_p9), %s1167_s14, 512, %s1178_s6, %s534_s5, %s1024_s25, %s1024_s25, %s1025_s23   ;;  %v492_v24 = vsel %vm488_vm5, %v756_v6, %v414_v5 }
  0x7a   : > { %847 = vpow2.f32 %v440_v13  ;;  %s549_s14 = sshll.u32 %s1161_s13, 4  ;;  %s1216_s8 = scalar_lea.hbm %s1271_s3, %s770_s12  ;;  %s1209_s14 = int_to_ptr.vmem [resolvable:$true] %s549_s14 }
  0x7b   : > { %s529_s11 = scalar_lea.sflag [#allocation4], %s1147_s9  ;;  %s921_s24 = scalar_lea.vmem %s1209_s14, 512 }
  0x7c   : > { %p922_p5 = scmp.ne.s32.totalorder %s1209_s14, %s921_s24  ;;  %s1026_s22 = smov [#allocation8]  }
  0x7d   : > { %s925_s18 = sshll.u32 %s1026_s22, 4  ;;  %s926_s18 = int_to_ptr.vmem [resolvable:$false] %s925_s18 }
  0x7e   : > { %p923_p4 = pnand %p922_p5, %p1107_p9  ;;  %s927_s10 = scalar_lea.vmem %s926_s18, 1024 }
  0x7f   : > { %p928_p7 = scmp.lt.s32.totalorder %s1209_s14, %s926_s18  ;;  %p929_p10 = scmp.lt.s32.totalorder %s927_s10, %s921_s24 }
  0x80   : > { %p924_p6 = pneg %p923_p4 }
  0x81   : > { %p930_p13 = por %p929_p10, %p928_p7 }
  0x83   : > { %p931_p0 = pnand %p930_p13, %p924_p6 }
  0x87   : > { %v848_v14 = vpop.eup %847 }
  0x88   : > { %v448_v15 = vadd.f32 1.0, %v848_v14  ;;  %v451_v16 = vmul.f32 -0.5, %v848_v14  ;;  %v454_v18 = vand.u32 2147483647, %v848_v14 }
  0x8a   : > { %849 = vlog2.f32 %v448_v15  ;;  %v452_v17 = vadd.f32 1.0, %v451_v16  ;;  %vm455_vm4 = vcmp.lt.f32.partialorder %v454_v18, 0.0004427343 }
  0x8c   : > { %v453_v19 = vmul.f32 %v848_v14, %v452_v17 }
  0x97   : > { %v850_v20 = vpop.eup %849 }
  0x98   : > { %v450_v22 = vmul.f32 0.6931472, %v850_v20 }
  0x9a   : > { %v456_v23 = vsel %vm455_vm4, %v453_v19, %v450_v22 }
  0x9b   : > { %v484_v25 = vadd.f32 %v456_v23, %v424_v21 }
  0x9d   : > { %v496_v26 = vsub.f32 %v484_v25, %v492_v24 }
  0x9f   : > { %v500_v27 = vsel %vm1169_vm3, %v496_v26, 0.0 }
  0xa0   : > { %520 = vst [vmem:[%s1161_s13] sm:$0xff] %v500_v27 }
  0xa1   : > { %934 = shalt.err (!%p931_p0)
}
  0xa2   : > { %s935_s13 = scalar_lea.hbm %s1216_s8, 512  ;;  %s939_s26 = scalar_lea.hbm %s1271_s3, 1024 }
  0xa3   : > { %p936_p1 = scmp.ne.s32.totalorder %s1216_s8, %s935_s13  ;;  %p940_p3 = scmp.lt.s32.totalorder %s1216_s8, %s1271_s3 }
  0xa4   : > { %p941_p5 = scmp.lt.s32.totalorder %s939_s26, %s935_s13 }
  0xa5   : > { %p937_p8 = pnand %p936_p1, %p1107_p9 }
  0xa6   : > { %p942_p4 = por %p941_p5, %p940_p3 }
  0xa7   : > { %p938_p2 = pneg %p937_p8 }
  0xa9   : > { %p943_p6 = pnand %p942_p4, %p938_p2 }
  0xab   : > { %946 = shalt.err (!%p943_p6)
}
  0xac   : > { %775 = dma.vmem_to_hbm [thread:$0]  (%p1107_p9), %s1209_s14, 512, %s1216_s8, %s529_s11, %s1024_s25, %s1024_s25, %s1025_s23  }
  0xad PF: > { %s582_s21 = sand.u32 1, %s989_s15   ;;  %p780_p7 = pnand %p740_p12, %p1114_p11 }
  0xae   : > { %s583_s27 = scalar_lea.sflag [#allocation4], %s582_s21 }
  0xaf   : > { %p781_p10 = pneg %p780_p7 }
  0xb1   : > { %980 = dma.done.wait (%p781_p10), %s583_s27, 512  }
  0xb2   : > { %982 = vsyncadd (%p781_p10), %s583_s27, 4294966784  ;;  %s592_s6 = scalar_lea.sflag [#allocation10], %s582_s21 }
  0xb3   : > { %984 = dma.done.wait (%p781_p10), %s592_s6, 512  }
  0xb4   : > { %986 = vsyncadd (%p781_p10), %s592_s6, 4294966784  ;;  %s27_s20 = sadd.s32 1, %s1009_s20   ;;  %s1282_s28 = sld [smem:[#allocation18_spill]] }
  0xb5   : > { %p24_p13 = scmp.ge.s32.totalorder %s27_s20, 4   ;;  %s1283_s25 = sld [smem:[#allocation17_spill]] }
  0xb6   : > { %s1284_s15 = smov %s993_s16  ;;  %s1285_s16 = smov %s997_s17 }
  0xb7   : > { %s1287_s18 = smov %s1005_s19  ;;  %26 = sbr.rel (!%p24_p13) target bundleno = 10 (0xa), region = 124 }
  0xba   : > { %s1286_s17 = smov %s1282_s28 }
  0xbb   : > { %s1288_s19 = smov %s1283_s25 }
  0xbc   :  { %597 = vsyncpa [#allocation3], 1 }
  0xbd   :  { %599 = vsyncpa [#allocation3 + $0x1], 1 }
  0xbe   :  { %600 = vsyncpa [#allocation6], 1 }
  0xbf   :  { %602 = vsyncpa [#allocation6 + $0x1], 1 }
  0xc0   :  { %603 = vsyncpa [#allocation4], 1 }
  0xc1   :  { %605 = vsyncpa [#allocation4 + $0x1], 1 }
  0xc2   :  { %606 = vsyncpa [#allocation10], 1 }
  0xc3   :  { %608 = vsyncpa [#allocation10 + $0x1], 1 }

</bundles_post_ra>
